<compile_context>
chip_gen: v7x
topology: tpu7x:2x2x1
jax: 0.10.0
libtpu: 0.0.40
codegen_flags: <defaults>
</compile_context>

<pallas_src>
import numpy as np

import jax
import jax.numpy as jnp
from jax import lax
from jax.experimental import pallas as pl
from jax.experimental.pallas import tpu as pltpu

KERNEL_SIZE = 4
NEGATIVE_SLOPE = 0.2
PADDING = 1
STRIDE = 2
BN_EPS = 1e-5

# Fixed small module config.
IMG = 16          # opt.img_size
C_IN = 4          # opt.in_channels
C1 = 8            # opt.out_channels      (after 1-Initial-Conv)
C2 = 2 * C1       # pyramid doubling      (after 2-Pyramid-Conv)
H1 = IMG // 2     # 8
H2 = IMG // 4     # 4
W2 = H2           # 4
COLS = 64         # every activation slab is 64 lanes wide: 16*4 = 8*8 = 4*16


# ----------------------------- Pallas kernel ------------------------------- #

def _discriminator_kernel(xp_ref, w1s_ref, w2s_ref, w3rep_ref, bn_ref,
                          out_ref, y1pad_ref):
    """Fused Discriminator forward.

    Activation layout: 2D slabs, rows = (n, y), cols = (x, c) (lane-dense).
      xp    : (N*16 + 2, 64)   input, H-zero-padded top/bottom
      y1    : (N*8, 64)        after L1 (padded into y1pad scratch for L2)
      feats : (N*4, 64)        after L2 + BN + LeakyReLU
    Each conv layer is ONE MXU matmul:  Y = [A_0|A_1|A_2|A_3] @ Wstack,
    where A_ky is a stride-2 sublane gather of the padded input.
    Classifier is VPU-only: elementwise multiply + reduces + sigmoid.
    """
    n = (xp_ref.shape[0] - 2) // IMG
    rows1 = n * H1
    rows2 = n * H2

    def leaky(v):
        return jnp.where(v >= 0.0, v, NEGATIVE_SLOPE * v)

    def stacked_taps(src_ref, rows_out, h_out):
        # Gather the 4 ky taps with stride-2 sublane reads from the H-padded
        # slab and stack them along the contraction axis -> (rows_out, 4*COLS).
        # ky=0 / ky=3 can cross a sample boundary through the shared padding
        # row, so those output rows are zeroed (they correspond to H padding).
        oy = lax.broadcasted_iota(jnp.int32, (rows_out, 1), 0) % h_out
        taps = []
        for ky in range(KERNEL_SIZE):
            a = src_ref[pl.ds(ky, rows_out, stride=STRIDE), :]
            if ky == 0:                          # iy = -1 when oy == 0
                a = jnp.where(oy == 0, 0.0, a)
            elif ky == KERNEL_SIZE - 1:          # iy = h_in when oy == h_out-1
                a = jnp.where(oy == h_out - 1, 0.0, a)
            taps.append(a)
        return jnp.concatenate(taps, axis=1)

    # ---- L1: Conv(4->8, k4 s2 p1, no bias) + LeakyReLU ---------------------
    a1 = stacked_taps(xp_ref, rows1, H1)                              # (N*8, 256)
    y1 = leaky(jnp.dot(a1, w1s_ref[...],
                       preferred_element_type=jnp.float32))           # (N*8, 64)

    # H-zero-pad y1 into scratch for the next strided gather.
    zrow = jnp.zeros((1, COLS), jnp.float32)
    y1pad_ref[0:1, :] = zrow
    y1pad_ref[1:rows1 + 1, :] = y1
    y1pad_ref[rows1 + 1:rows1 + 2, :] = zrow

    # ---- L2: Conv(8->16, k4 s2 p1, no bias) ---------------------------------
    a2 = stacked_taps(y1pad_ref, rows2, H2)                           # (N*4, 256)
    y2 = jnp.dot(a2, w2s_ref[...],
                 preferred_element_type=jnp.float32)                  # (N*4, 64)

    # ---- BatchNorm2d (training stats, biased var, affine) + LeakyReLU -------
    # cols = (ox, c): per-channel reduce = sum of the four 16-lane groups.
    inv_m = 1.0 / float(rows2 * W2)

    def chan_sum_bcast(row):                                          # (1, 64) -> (1, 64)
        s = (row[:, 0 * C2:1 * C2] + row[:, 1 * C2:2 * C2]
             + row[:, 2 * C2:3 * C2] + row[:, 3 * C2:4 * C2])         # (1, 16)
        return jnp.tile(s, (1, W2))                                   # (1, 64)

    mean = inv_m * chan_sum_bcast(jnp.sum(y2, axis=0, keepdims=True))
    d = y2 - mean
    var = inv_m * chan_sum_bcast(jnp.sum(d * d, axis=0, keepdims=True))  # two-pass
    gamma = bn_ref[0:1, :]
    beta = bn_ref[1:2, :]
    feats = leaky(d * (lax.rsqrt(var + BN_EPS) * gamma) + beta)       # (N*4, 64)

    # ---- Classifier: Conv(16->1, k4 s1 p0) + Sigmoid  (VPU only) ------------
    lane_red = jnp.sum(feats * w3rep_ref[...], axis=1, keepdims=True)  # (N*4, 1)
    logits = jnp.sum(lane_red.reshape(n, H2), axis=1, keepdims=True)   # (N, 1)
    cls = jax.nn.sigmoid(logits)

    # ---- Merged output slab: rows [0, 4N) = features, rows [4N, 5N) = cls ---
    out_ref[0:rows2, :] = feats
    out_ref[rows2:rows2 + n, :] = jnp.broadcast_to(cls, (n, COLS))


# --------------------------- host-side transforms --------------------------- #

def _row_conv_weight(w_hwio, w_in, w_out):
    """Per-ky block-Toeplitz slab:
       Wrow[ky, ix*Cin+ci, ox*Cout+co] = w[ky, ix - STRIDE*ox + PADDING, ci, co]
       when that kx is in range, else 0 (implements W-direction zero padding)."""
    kh, kw, cin, cout = w_hwio.shape
    ix = np.arange(w_in)[:, None]
    ox = np.arange(w_out)[None, :]
    kx = ix - STRIDE * ox + PADDING                           # (w_in, w_out)
    valid = (kx >= 0) & (kx < kw)
    kxc = np.clip(kx, 0, kw - 1)
    g = w_hwio[:, kxc, :, :]                                  # (kh, w_in, w_out, cin, cout)
    g = jnp.where(jnp.asarray(valid)[None, :, :, None, None], g, 0.0)
    g = jnp.transpose(g, (0, 1, 3, 2, 4))                     # (kh, w_in, cin, w_out, cout)
    return g.reshape(kh, w_in * cin, w_out * cout)


def _stacked_conv_weight(w_hwio, w_in, w_out):
    """Stack the 4 per-ky slabs vertically along the contraction axis ->
       (KERNEL_SIZE * w_in * cin, w_out * cout); matches the in-kernel tap
       concatenation order."""
    kh, _, cin, cout = w_hwio.shape
    wr = _row_conv_weight(w_hwio, w_in, w_out)                # (kh, w_in*cin, w_out*cout)
    return wr.reshape(kh * w_in * cin, w_out * cout)


# ------------------------------- JAX wrapper -------------------------------- #

def discriminator_forward(x_nchw, w1, w2, w3, bn_gamma, bn_beta):
    """
    x_nchw   : (N, 4, 16, 16) f32 (PyTorch NCHW)
    w1       : (4, 4, 4, 8)   HWIO   1-Initial-Conv weight
    w2       : (4, 4, 8, 16)  HWIO   2-Pyramid-Conv weight
    w3       : (4, 4, 16, 1)  HWIO   3-Final-Conv (classifier) weight
    bn_gamma : (16,)          BatchNorm2d weight  (gamma)
    bn_beta  : (16,)          BatchNorm2d bias    (beta)
    returns (classifier (N,), features (N, 16, 4, 4) NCHW) — matching torch.
    """
    n = x_nchw.shape[0]

    # Layout plumbing: NCHW -> NHWC -> (N*H, W*C) slab, H-zero-pad top/bottom.
    x = jnp.transpose(x_nchw, (0, 2, 3, 1)).astype(jnp.float32)
    xm = x.reshape(n * IMG, IMG * C_IN)                                # (N*16, 64)
    xp = jnp.pad(xm, ((1, 1), (0, 0)))                                 # (N*16+2, 64)

    # Host-side weight transforms (pure layout on the weights, O(1) in N).
    w1s = _stacked_conv_weight(w1.astype(jnp.float32), IMG, H1)        # (256, 64)
    w2s = _stacked_conv_weight(w2.astype(jnp.float32), H1, H2)         # (256, 64)
    w3m = w3.astype(jnp.float32)[..., 0].reshape(KERNEL_SIZE, H2 * C2)  # (4, 64)
    w3rep = jnp.tile(w3m, (n, 1))                                      # (N*4, 64)
    bnp = jnp.concatenate(
        [jnp.tile(bn_gamma.astype(jnp.float32)[None, :], (1, W2)),
         jnp.tile(bn_beta.astype(jnp.float32)[None, :], (1, W2))],
        axis=0)                                                        # (2, 64)

    out = pl.pallas_call(
        _discriminator_kernel,
        out_shape=jax.ShapeDtypeStruct(((H2 + 1) * n, COLS), jnp.float32),
        in_specs=[pl.BlockSpec(memory_space=pltpu.MemorySpace.VMEM)
                  for _ in range(5)],
        out_specs=pl.BlockSpec(memory_space=pltpu.MemorySpace.VMEM),
        scratch_shapes=[pltpu.VMEM((n * H1 + 2, COLS), jnp.float32)],
    )(xp, w1s, w2s, w3rep, bnp)

    feats_nchw = jnp.transpose(out[:n * H2].reshape(n, H2, W2, C2), (0, 3, 1, 2))
    classifier = out[n * H2:, 0]                                       # (N,)
    return classifier, feats_nchw


# ----------------------------- plain-JAX reference -------------------------- #

def _reference_forward(x_nchw, w1, w2, w3, bn_gamma, bn_beta):
    hp = jax.lax.Precision.HIGHEST
    x = jnp.transpose(x_nchw, (0, 2, 3, 1)).astype(jnp.float32)
    dn = ('NHWC', 'HWIO', 'NHWC')
    pad = ((PADDING, PADDING), (PADDING, PADDING))
    y1 = lax.conv_general_dilated(x, w1, (STRIDE, STRIDE), pad,
                                  dimension_numbers=dn, precision=hp)
    y1 = jnp.where(y1 >= 0, y1, NEGATIVE_SLOPE * y1)
    y2 = lax.conv_general_dilated(y1, w2, (STRIDE, STRIDE), pad,
                                  dimension_numbers=dn, precision=hp)
    mean = jnp.mean(y2, axis=(0, 1, 2), keepdims=True)
    var = jnp.mean((y2 - mean) ** 2, axis=(0, 1, 2), keepdims=True)
    y2 = (y2 - mean) / jnp.sqrt(var + BN_EPS)
    y2 = y2 * bn_gamma[None, None, None, :] + bn_beta[None, None, None, :]
    y2 = jnp.where(y2 >= 0, y2, NEGATIVE_SLOPE * y2)
    y3 = lax.conv_general_dilated(y2, w3, (1, 1), 'VALID',
                                  dimension_numbers=dn, precision=hp)
    cls = jax.nn.sigmoid(y3).reshape(-1)
    return cls, jnp.transpose(y2, (0, 3, 1, 2))


def _kaiming_uniform(key, kh, kw, cin, cout):
    fan_in = kh * kw * cin
    bound = 1.0 / jnp.sqrt(jnp.float32(fan_in))
    return jax.random.uniform(key, (kh, kw, cin, cout), jnp.float32,
                              minval=-bound, maxval=bound)


# --------------------------------- main ------------------------------------- #

if __name__ == "__main__":
    key = jax.random.PRNGKey(0)
    kx, k1, k2, k3, kg, kb = jax.random.split(key, 6)

    N = 2
    x = jax.random.normal(kx, (N, C_IN, IMG, IMG), jnp.float32)        # NCHW input

    w1 = _kaiming_uniform(k1, KERNEL_SIZE, KERNEL_SIZE, C_IN, C1)
    w2 = _kaiming_uniform(k2, KERNEL_SIZE, KERNEL_SIZE, C1, C2)
    w3 = _kaiming_uniform(k3, KERNEL_SIZE, KERNEL_SIZE, C2, 1)
    # BatchNorm affine parameters (non-trivial to actually exercise the path).
    bn_gamma = 1.0 + 0.1 * jax.random.normal(kg, (C2,), jnp.float32)
    bn_beta = 0.05 * jax.random.normal(kb, (C2,), jnp.float32)

    classifier, features = jax.jit(discriminator_forward)(
        x, w1, w2, w3, bn_gamma, bn_beta)
    jax.block_until_ready((classifier, features))

    assert classifier.shape == (N,)
    assert features.shape == (N, C2, H2, H2)

    cls_ref, feats_ref = jax.jit(_reference_forward)(
        x, w1, w2, w3, bn_gamma, bn_beta)
    np.testing.assert_allclose(np.asarray(classifier), np.asarray(cls_ref),
                               rtol=2e-3, atol=2e-3)
    np.testing.assert_allclose(np.asarray(features), np.asarray(feats_ref),
                               rtol=2e-3, atol=2e-3)

    print("KERNEL_OK")
</pallas_src>

<mosaic_0001>
module attributes {stable_mosaic.version = 11 : i64} {
  func.func @_discriminator_kernel(%arg0: memref<34x64xf32, #tpu.memory_space<vmem>>, %arg1: memref<256x64xf32, #tpu.memory_space<vmem>>, %arg2: memref<256x64xf32, #tpu.memory_space<vmem>>, %arg3: memref<8x64xf32, #tpu.memory_space<vmem>>, %arg4: memref<2x64xf32, #tpu.memory_space<vmem>>, %arg5: memref<10x64xf32, #tpu.memory_space<vmem>>, %arg6: memref<18x64xf32, #tpu.memory_space<vmem>>) attributes {dimension_semantics = [], scalar_prefetch = 0 : i64, scratch_operands = 1 : i64, tpu.core_type = #tpu.core_type<tc>} {
    %0 = tpu.iota {dimensions = array<i32: 0>} : vector<16x1xi32>
    %c8_i32 = arith.constant 8 : i32
    %c0_i32 = arith.constant 0 : i32
    %1 = arith.cmpi eq, %c8_i32, %c0_i32 : i32
    %c1_i32 = arith.constant 1 : i32
    %2 = arith.select %1, %c1_i32, %c8_i32 : i32
    %3 = vector.broadcast %2 : i32 to vector<16x1xi32>
    %4 = arith.remsi %0, %3 : vector<16x1xi32>
    %c0_i32_0 = arith.constant 0 : i32
    %5 = vector.broadcast %c0_i32_0 : i32 to vector<16x1xi32>
    %6 = arith.cmpi ne, %4, %5 : vector<16x1xi32>
    %c0_i32_1 = arith.constant 0 : i32
    %7 = vector.broadcast %c0_i32_1 : i32 to vector<16x1xi32>
    %8 = arith.cmpi slt, %4, %7 : vector<16x1xi32>
    %c0_i32_2 = arith.constant 0 : i32
    %9 = arith.cmpi slt, %2, %c0_i32_2 : i32
    %10 = vector.broadcast %9 : i1 to vector<16x1xi1>
    %11 = vector.broadcast %10 : vector<16x1xi1> to vector<16x1xi1>
    %12 = arith.xori %8, %11 : vector<16x1xi1>
    %13 = arith.andi %12, %6 : vector<16x1xi1>
    %14 = vector.broadcast %2 : i32 to vector<16x1xi32>
    %15 = arith.addi %4, %14 : vector<16x1xi32>
    %16 = arith.select %13, %15, %4 : vector<16x1xi1>, vector<16x1xi32>
    %c0 = arith.constant 0 : index
    %c0_3 = arith.constant 0 : index
    %17 = tpu.strided_load %arg0[%c0, %c0_3] {strides = array<i32: 2, 1>} : memref<34x64xf32, #tpu.memory_space<vmem>>, vector<16x64xf32>
    %c0_i32_4 = arith.constant 0 : i32
    %18 = vector.broadcast %c0_i32_4 : i32 to vector<16x1xi32>
    %19 = arith.cmpi eq, %16, %18 : vector<16x1xi32>
    %cst = arith.constant 0.000000e+00 : f32
    %20 = vector.shape_cast %19 : vector<16x1xi1> to vector<16x1xi1>
    %21 = vector.broadcast %20 : vector<16x1xi1> to vector<16x64xi1>
    %22 = vector.broadcast %cst : f32 to vector<16x64xf32>
    %23 = arith.select %21, %22, %17 : vector<16x64xi1>, vector<16x64xf32>
    %c1 = arith.constant 1 : index
    %c0_5 = arith.constant 0 : index
    %24 = tpu.strided_load %arg0[%c1, %c0_5] {strides = array<i32: 2, 1>} : memref<34x64xf32, #tpu.memory_space<vmem>>, vector<16x64xf32>
    %c2 = arith.constant 2 : index
    %c0_6 = arith.constant 0 : index
    %25 = tpu.strided_load %arg0[%c2, %c0_6] {strides = array<i32: 2, 1>} : memref<34x64xf32, #tpu.memory_space<vmem>>, vector<16x64xf32>
    %c3 = arith.constant 3 : index
    %c0_7 = arith.constant 0 : index
    %26 = tpu.strided_load %arg0[%c3, %c0_7] {strides = array<i32: 2, 1>} : memref<34x64xf32, #tpu.memory_space<vmem>>, vector<16x64xf32>
    %c7_i32 = arith.constant 7 : i32
    %27 = vector.broadcast %c7_i32 : i32 to vector<16x1xi32>
    %28 = arith.cmpi eq, %16, %27 : vector<16x1xi32>
    %cst_8 = arith.constant 0.000000e+00 : f32
    %29 = vector.shape_cast %28 : vector<16x1xi1> to vector<16x1xi1>
    %30 = vector.broadcast %29 : vector<16x1xi1> to vector<16x64xi1>
    %31 = vector.broadcast %cst_8 : f32 to vector<16x64xf32>
    %32 = arith.select %30, %31, %26 : vector<16x64xi1>, vector<16x64xf32>
    %33 = tpu.concatenate %23, %24, %25, %32 in 1 : vector<16x64xf32>, vector<16x64xf32>, vector<16x64xf32>, vector<16x64xf32> -> vector<16x256xf32>
    %c0_9 = arith.constant 0 : index
    %c0_10 = arith.constant 0 : index
    %34 = vector.load %arg1[%c0_9, %c0_10] : memref<256x64xf32, #tpu.memory_space<vmem>>, vector<256x64xf32>
    %cst_11 = arith.constant dense<0.000000e+00> : vector<16x64xf32>
    %35 = tpu.matmul %33, %34, %cst_11 {dimension_numbers = #tpu.dot_dimension_numbers<[1], [0], [0], [1], [0, 0, 1, 1], [], []>} : vector<16x256xf32>, vector<256x64xf32>, vector<16x64xf32> -> vector<16x64xf32>
    %cst_12 = arith.constant 0.000000e+00 : f32
    %36 = vector.broadcast %cst_12 : f32 to vector<16x64xf32>
    %37 = arith.cmpf oge, %35, %36 : vector<16x64xf32>
    %cst_13 = arith.constant 2.000000e-01 : f32
    %38 = vector.broadcast %cst_13 : f32 to vector<16x64xf32>
    %39 = arith.mulf %38, %35 : vector<16x64xf32>
    %40 = arith.select %37, %35, %39 : vector<16x64xi1>, vector<16x64xf32>
    %cst_14 = arith.constant 0.000000e+00 : f32
    %41 = vector.broadcast %cst_14 : f32 to vector<1x64xf32>
    %c0_15 = arith.constant 0 : index
    %c0_16 = arith.constant 0 : index
    %42 = vector.load %arg6[%c0_15, %c0_16] : memref<18x64xf32, #tpu.memory_space<vmem>>, vector<1x64xf32>
    tpu.vector_store %arg6[%c0_15, %c0_16], %41 {strides = array<i32>} : memref<18x64xf32, #tpu.memory_space<vmem>>, vector<1x64xf32>,
    %c1_17 = arith.constant 1 : index
    %c0_18 = arith.constant 0 : index
    %43 = vector.load %arg6[%c1_17, %c0_18] : memref<18x64xf32, #tpu.memory_space<vmem>>, vector<16x64xf32>
    tpu.vector_store %arg6[%c1_17, %c0_18], %40 {strides = array<i32>} : memref<18x64xf32, #tpu.memory_space<vmem>>, vector<16x64xf32>,
    %c17 = arith.constant 17 : index
    %c0_19 = arith.constant 0 : index
    %44 = vector.load %arg6[%c17, %c0_19] : memref<18x64xf32, #tpu.memory_space<vmem>>, vector<1x64xf32>
    tpu.vector_store %arg6[%c17, %c0_19], %41 {strides = array<i32>} : memref<18x64xf32, #tpu.memory_space<vmem>>, vector<1x64xf32>,
    %45 = tpu.iota {dimensions = array<i32: 0>} : vector<8x1xi32>
    %c4_i32 = arith.constant 4 : i32
    %c0_i32_20 = arith.constant 0 : i32
    %46 = arith.cmpi eq, %c4_i32, %c0_i32_20 : i32
    %c1_i32_21 = arith.constant 1 : i32
    %47 = arith.select %46, %c1_i32_21, %c4_i32 : i32
    %48 = vector.broadcast %47 : i32 to vector<8x1xi32>
    %49 = arith.remsi %45, %48 : vector<8x1xi32>
    %c0_i32_22 = arith.constant 0 : i32
    %50 = vector.broadcast %c0_i32_22 : i32 to vector<8x1xi32>
    %51 = arith.cmpi ne, %49, %50 : vector<8x1xi32>
    %c0_i32_23 = arith.constant 0 : i32
    %52 = vector.broadcast %c0_i32_23 : i32 to vector<8x1xi32>
    %53 = arith.cmpi slt, %49, %52 : vector<8x1xi32>
    %c0_i32_24 = arith.constant 0 : i32
    %54 = arith.cmpi slt, %47, %c0_i32_24 : i32
    %55 = vector.broadcast %54 : i1 to vector<8x1xi1>
    %56 = vector.broadcast %55 : vector<8x1xi1> to vector<8x1xi1>
    %57 = arith.xori %53, %56 : vector<8x1xi1>
    %58 = arith.andi %57, %51 : vector<8x1xi1>
    %59 = vector.broadcast %47 : i32 to vector<8x1xi32>
    %60 = arith.addi %49, %59 : vector<8x1xi32>
    %61 = arith.select %58, %60, %49 : vector<8x1xi1>, vector<8x1xi32>
    %c0_25 = arith.constant 0 : index
    %c0_26 = arith.constant 0 : index
    %62 = tpu.strided_load %arg6[%c0_25, %c0_26] {strides = array<i32: 2, 1>} : memref<18x64xf32, #tpu.memory_space<vmem>>, vector<8x64xf32>
    %c0_i32_27 = arith.constant 0 : i32
    %63 = vector.broadcast %c0_i32_27 : i32 to vector<8x1xi32>
    %64 = arith.cmpi eq, %61, %63 : vector<8x1xi32>
    %cst_28 = arith.constant 0.000000e+00 : f32
    %65 = vector.shape_cast %64 : vector<8x1xi1> to vector<8x1xi1>
    %66 = vector.broadcast %65 : vector<8x1xi1> to vector<8x64xi1>
    %67 = vector.broadcast %cst_28 : f32 to vector<8x64xf32>
    %68 = arith.select %66, %67, %62 : vector<8x64xi1>, vector<8x64xf32>
    %c1_29 = arith.constant 1 : index
    %c0_30 = arith.constant 0 : index
    %69 = tpu.strided_load %arg6[%c1_29, %c0_30] {strides = array<i32: 2, 1>} : memref<18x64xf32, #tpu.memory_space<vmem>>, vector<8x64xf32>
    %c2_31 = arith.constant 2 : index
    %c0_32 = arith.constant 0 : index
    %70 = tpu.strided_load %arg6[%c2_31, %c0_32] {strides = array<i32: 2, 1>} : memref<18x64xf32, #tpu.memory_space<vmem>>, vector<8x64xf32>
    %c3_33 = arith.constant 3 : index
    %c0_34 = arith.constant 0 : index
    %71 = tpu.strided_load %arg6[%c3_33, %c0_34] {strides = array<i32: 2, 1>} : memref<18x64xf32, #tpu.memory_space<vmem>>, vector<8x64xf32>
    %c3_i32 = arith.constant 3 : i32
    %72 = vector.broadcast %c3_i32 : i32 to vector<8x1xi32>
    %73 = arith.cmpi eq, %61, %72 : vector<8x1xi32>
    %cst_35 = arith.constant 0.000000e+00 : f32
    %74 = vector.shape_cast %73 : vector<8x1xi1> to vector<8x1xi1>
    %75 = vector.broadcast %74 : vector<8x1xi1> to vector<8x64xi1>
    %76 = vector.broadcast %cst_35 : f32 to vector<8x64xf32>
    %77 = arith.select %75, %76, %71 : vector<8x64xi1>, vector<8x64xf32>
    %78 = tpu.concatenate %68, %69, %70, %77 in 1 : vector<8x64xf32>, vector<8x64xf32>, vector<8x64xf32>, vector<8x64xf32> -> vector<8x256xf32>
    %c0_36 = arith.constant 0 : index
    %c0_37 = arith.constant 0 : index
    %79 = vector.load %arg2[%c0_36, %c0_37] : memref<256x64xf32, #tpu.memory_space<vmem>>, vector<256x64xf32>
    %cst_38 = arith.constant dense<0.000000e+00> : vector<8x64xf32>
    %80 = tpu.matmul %78, %79, %cst_38 {dimension_numbers = #tpu.dot_dimension_numbers<[1], [0], [0], [1], [0, 0, 1, 1], [], []>} : vector<8x256xf32>, vector<256x64xf32>, vector<8x64xf32> -> vector<8x64xf32>
    %cst_39 = arith.constant dense<0.000000e+00> : vector<64xf32>
    %81 = vector.multi_reduction <add>, %80, %cst_39 [0] : vector<8x64xf32> to vector<64xf32>
    %82 = vector.shape_cast %81 : vector<64xf32> to vector<1x64xf32>
    %83 = vector.extract_strided_slice %82 {offsets = [0, 0], sizes = [1, 16], strides = [1, 1]} : vector<1x64xf32> to vector<1x16xf32>
    %84 = vector.extract_strided_slice %82 {offsets = [0, 16], sizes = [1, 16], strides = [1, 1]} : vector<1x64xf32> to vector<1x16xf32>
    %85 = arith.addf %83, %84 : vector<1x16xf32>
    %86 = vector.extract_strided_slice %82 {offsets = [0, 32], sizes = [1, 16], strides = [1, 1]} : vector<1x64xf32> to vector<1x16xf32>
    %87 = arith.addf %85, %86 : vector<1x16xf32>
    %88 = vector.extract_strided_slice %82 {offsets = [0, 48], sizes = [1, 16], strides = [1, 1]} : vector<1x64xf32> to vector<1x16xf32>
    %89 = arith.addf %87, %88 : vector<1x16xf32>
    %90 = tpu.concatenate %89, %89, %89, %89 in 1 : vector<1x16xf32>, vector<1x16xf32>, vector<1x16xf32>, vector<1x16xf32> -> vector<1x64xf32>
    %cst_40 = arith.constant 3.125000e-02 : f32
    %91 = vector.broadcast %cst_40 : f32 to vector<1x64xf32>
    %92 = arith.mulf %91, %90 : vector<1x64xf32>
    %93 = vector.broadcast %92 : vector<1x64xf32> to vector<8x64xf32>
    %94 = arith.subf %80, %93 : vector<8x64xf32>
    %95 = arith.mulf %94, %94 : vector<8x64xf32>
    %cst_41 = arith.constant dense<0.000000e+00> : vector<64xf32>
    %96 = vector.multi_reduction <add>, %95, %cst_41 [0] : vector<8x64xf32> to vector<64xf32>
    %97 = vector.shape_cast %96 : vector<64xf32> to vector<1x64xf32>
    %98 = vector.extract_strided_slice %97 {offsets = [0, 0], sizes = [1, 16], strides = [1, 1]} : vector<1x64xf32> to vector<1x16xf32>
    %99 = vector.extract_strided_slice %97 {offsets = [0, 16], sizes = [1, 16], strides = [1, 1]} : vector<1x64xf32> to vector<1x16xf32>
    %100 = arith.addf %98, %99 : vector<1x16xf32>
    %101 = vector.extract_strided_slice %97 {offsets = [0, 32], sizes = [1, 16], strides = [1, 1]} : vector<1x64xf32> to vector<1x16xf32>
    %102 = arith.addf %100, %101 : vector<1x16xf32>
    %103 = vector.extract_strided_slice %97 {offsets = [0, 48], sizes = [1, 16], strides = [1, 1]} : vector<1x64xf32> to vector<1x16xf32>
    %104 = arith.addf %102, %103 : vector<1x16xf32>
    %105 = tpu.concatenate %104, %104, %104, %104 in 1 : vector<1x16xf32>, vector<1x16xf32>, vector<1x16xf32>, vector<1x16xf32> -> vector<1x64xf32>
    %cst_42 = arith.constant 3.125000e-02 : f32
    %106 = vector.broadcast %cst_42 : f32 to vector<1x64xf32>
    %107 = arith.mulf %106, %105 : vector<1x64xf32>
    %c0_43 = arith.constant 0 : index
    %c0_44 = arith.constant 0 : index
    %108 = vector.load %arg4[%c0_43, %c0_44] : memref<2x64xf32, #tpu.memory_space<vmem>>, vector<1x64xf32>
    %c1_45 = arith.constant 1 : index
    %c0_46 = arith.constant 0 : index
    %109 = vector.load %arg4[%c1_45, %c0_46] : memref<2x64xf32, #tpu.memory_space<vmem>>, vector<1x64xf32>
    %cst_47 = arith.constant 9.99999974E-6 : f32
    %110 = vector.broadcast %cst_47 : f32 to vector<1x64xf32>
    %111 = arith.addf %107, %110 : vector<1x64xf32>
    %112 = math.rsqrt %111 : vector<1x64xf32>
    %113 = arith.mulf %112, %108 : vector<1x64xf32>
    %114 = vector.broadcast %113 : vector<1x64xf32> to vector<8x64xf32>
    %115 = arith.mulf %94, %114 : vector<8x64xf32>
    %116 = vector.broadcast %109 : vector<1x64xf32> to vector<8x64xf32>
    %117 = arith.addf %115, %116 : vector<8x64xf32>
    %cst_48 = arith.constant 0.000000e+00 : f32
    %118 = vector.broadcast %cst_48 : f32 to vector<8x64xf32>
    %119 = arith.cmpf oge, %117, %118 : vector<8x64xf32>
    %cst_49 = arith.constant 2.000000e-01 : f32
    %120 = vector.broadcast %cst_49 : f32 to vector<8x64xf32>
    %121 = arith.mulf %120, %117 : vector<8x64xf32>
    %122 = arith.select %119, %117, %121 : vector<8x64xi1>, vector<8x64xf32>
    %c0_50 = arith.constant 0 : index
    %c0_51 = arith.constant 0 : index
    %123 = vector.load %arg3[%c0_50, %c0_51] : memref<8x64xf32, #tpu.memory_space<vmem>>, vector<8x64xf32>
    %124 = arith.mulf %122, %123 : vector<8x64xf32>
    %cst_52 = arith.constant dense<0.000000e+00> : vector<8xf32>
    %125 = vector.multi_reduction <add>, %124, %cst_52 [1] : vector<8x64xf32> to vector<8xf32>
    %126 = vector.shape_cast %125 : vector<8xf32> to vector<8x1xf32>
    %127 = vector.shape_cast %126 : vector<8x1xf32> to vector<2x4xf32>
    %cst_53 = arith.constant dense<0.000000e+00> : vector<2xf32>
    %128 = vector.multi_reduction <add>, %127, %cst_53 [1] : vector<2x4xf32> to vector<2xf32>
    %129 = vector.shape_cast %128 : vector<2xf32> to vector<2x1xf32>
    %130 = arith.negf %129 : vector<2x1xf32>
    %131 = math.exp %130 : vector<2x1xf32>
    %cst_54 = arith.constant 1.000000e+00 : f32
    %132 = vector.broadcast %cst_54 : f32 to vector<2x1xf32>
    %133 = arith.addf %132, %131 : vector<2x1xf32>
    %134 = arith.divf %132, %133 : vector<2x1xf32>
    %c0_55 = arith.constant 0 : index
    %c0_56 = arith.constant 0 : index
    %135 = vector.load %arg5[%c0_55, %c0_56] : memref<10x64xf32, #tpu.memory_space<vmem>>, vector<8x64xf32>
    tpu.vector_store %arg5[%c0_55, %c0_56], %122 {strides = array<i32>} : memref<10x64xf32, #tpu.memory_space<vmem>>, vector<8x64xf32>,
    %136 = vector.shape_cast %134 : vector<2x1xf32> to vector<2x1xf32>
    %137 = vector.broadcast %136 : vector<2x1xf32> to vector<2x64xf32>
    %c8 = arith.constant 8 : index
    %c0_57 = arith.constant 0 : index
    %138 = vector.load %arg5[%c8, %c0_57] : memref<10x64xf32, #tpu.memory_space<vmem>>, vector<2x64xf32>
    tpu.vector_store %arg5[%c8, %c0_57], %137 {strides = array<i32>} : memref<10x64xf32, #tpu.memory_space<vmem>>, vector<2x64xf32>,
    return
  }
}

</mosaic_0001>

<bundles_post_ra>
// kernel: discriminator_forward.1
= control target key start
LH: loop header
LB: loop body
LE: loop exit
PB: predicated region body
PF: predicated region fallthrough
CT: control target
= control target key end

     0   :  { %v20_v0 = vlaneseq  ;;  %s686_s29 = smov 64   ;;  %vm94_vm4 = vcmask 523264   ;;  %vm212_vm5 = vcmask 516096   ;;  %s690_s11 = smov 80   ;;  %vm386_vm10 = vcmask 130048   ;;  %s1014_s0 = inlined_call_operand.vmem [shape: f32[34,64], index: 0, kind: input, shape index: {}]   ;;  %s1015_s1 = inlined_call_operand.vmem [shape: f32[256,64], index: 1, kind: input, shape index: {}]   ;;  %s1016_s2 = inlined_call_operand.vmem [shape: f32[256,64], index: 2, kind: input, shape index: {}]   ;;  %s1017_s4 = inlined_call_operand.vmem [shape: f32[2,64], index: 4, kind: input, shape index: {}]   ;;  %s1018_s3 = inlined_call_operand.vmem [shape: f32[8,64], index: 3, kind: input, shape index: {}]   ;;  %s1019_s5 = inlined_call_operand.vmem [shape: f32[10,64], index: 5, kind: output, shape index: {}]  }
   0x1   :  { %v512_v2 = vld [vmem:[%s1014_s0 + $0x3] ss:$2 sm:$0xff]  ;;  %v118_v12 = vld [vmem:[%s1015_s1 + $0x98] sm:$0xff]  ;;  %v47_v40 = vld [vmem:[%s1014_s0] ss:$2 sm:$0xff]  ;;  %s691_s12 = smov 32  }
   0x2   :  { %v728_v1 = vshrl.u32 %v20_v0, 7  ;;  %v115_v3 = vld [vmem:[%s1015_s1 + $0x80] sm:$0xff]  ;;  %v116_v4 = vld [vmem:[%s1015_s1 + $0x88] sm:$0xff]  ;;  %v117_v8 = vld [vmem:[%s1015_s1 + $0x90] sm:$0xff]  ;;  %s692_s13 = smov 16   ;;  %s693_s14 = smov 48  }
   0x3   :  { %v589_v5 = vpack.c.bf16 %v116_v4, %v115_v3  ;;  %v99_v6 = vld [vmem:[%s1015_s1] sm:$0xff]  ;;  %v100_v7 = vld [vmem:[%s1015_s1 + $0x8] sm:$0xff]  ;;  %v101_v13 = vld [vmem:[%s1015_s1 + $0x10] sm:$0xff]  ;;  %v593_v16 = vpack.c.bf16 %v118_v12, %v117_v8  ;;  %vm388_vm11 = vcmask 261120   ;;  %vm390_vm12 = vcmask 392192  }
   0x4   :  { %v27_v9 = vand.u32 7, %v728_v1  ;;  %v22_v10 = vadd.s32 8, %v728_v1  ;;  %v591_v11 = vpack.c.bf16 %v100_v7, %v99_v6  ;;  %v102_v14 = vld [vmem:[%s1015_s1 + $0x18] sm:$0xff]  ;;  %v508_v15 = vld [vmem:[%s1014_s0 + $0x1] ss:$2 sm:$0xff]  ;;  %v121_v28 = vld [vmem:[%s1015_s1 + $0xb0] sm:$0xff] }
   0x5   :  { %590 = vmatprep.subr.bf16.mxu0 %v589_v5  ;;  %v119_v17 = vld [vmem:[%s1015_s1 + $0xa0] sm:$0xff]  ;;  %v120_v18 = vld [vmem:[%s1015_s1 + $0xa8] sm:$0xff]  ;;  %v595_v21 = vpack.c.bf16 %v102_v14, %v101_v13  ;;  %v509_v23 = vld [vmem:[%s1014_s0 + $0x11] ss:$2 sm:$0xff]  ;;  %vm487_vm14 = vcmask 1041409   ;;  %vm490_vm15 = vcmask 25600  }
   0x6   :  { %vm70_vm0 = vcmp.eq.s32.totalorder %v27_v9, 7  ;;  %v34_v19 = vand.u32 7, %v22_v10  ;;  %v513_v20 = vld [vmem:[%s1014_s0 + $0x13] ss:$2 sm:$0xff]  ;;  %592 = vmatpush3.bf16.msra.mxu0 %v591_v11  ;;  %v597_v24 = vpack.c.bf16 %v120_v18, %v119_v17  ;;  %v104_v26 = vld [vmem:[%s1015_s1 + $0x28] sm:$0xff]  ;;  %vm793_vm2 = vcmp.eq.s32.totalorder %v27_v9, 0 }
   0x7   :  { %v76_v22 = vsel %vm70_vm0, 0.0, %v512_v2  ;;  %594 = vmatprep.subr.bf16.mxu0 %v593_v16  ;;  %v103_v25 = vld [vmem:[%s1015_s1 + $0x20] sm:$0xff]  ;;  %v122_v29 = vld [vmem:[%s1015_s1 + $0xb8] sm:$0xff]  ;;  %v105_v34 = vld [vmem:[%s1015_s1 + $0x30] sm:$0xff]  ;;  %v56_v42 = vsel %vm793_vm2, 0.0, %v47_v40  ;;  %v687_v17 = vmov 0.0  }
   0x8   :  { %v664_v27 = vpack.i.bf16 %v508_v15, %v76_v22  ;;  %vm71_vm1 = vcmp.eq.s32.totalorder %v34_v19, 7  ;;  %v599_v32 = vpack.c.bf16 %v104_v26, %v103_v25  ;;  %v601_v33 = vpack.c.bf16 %v122_v29, %v121_v28  ;;  %v106_v35 = vld [vmem:[%s1015_s1 + $0x38] sm:$0xff]  ;;  %v123_v37 = vld [vmem:[%s1015_s1 + $0xc0] sm:$0xff]  ;;  %v124_v38 = vld [vmem:[%s1015_s1 + $0xc8] sm:$0xff]  ;;  %216 = vst.msk [vmem:[#allocation2 + $0x11] sm:$0x1] %vm212_vm5, %v687_v17 }
   0x9   :  { %v77_v30 = vsel %vm71_vm1, 0.0, %v513_v20  ;;  %vm803_vm3 = vcmp.eq.s32.totalorder %v34_v19, 0  ;;  %v603_v41 = vpack.c.bf16 %v106_v35, %v105_v34  ;;  %v507_v43 = vld [vmem:[%s1014_s0 + $0x10] ss:$2 sm:$0xff]  ;;  %v605_v44 = vpack.c.bf16 %v124_v38, %v123_v37  ;;  %v107_v45 = vld [vmem:[%s1015_s1 + $0x40] sm:$0xff]  ;;  %v108_v46 = vld [vmem:[%s1015_s1 + $0x48] sm:$0xff] }
   0xa   :  { %665 = vrot.lane.b32.xlu0 %v664_v27, %s686_s29  ;;  %v669_v31 = vpack.i.bf16 %v509_v23, %v77_v30  ;;  %596 = vmatpush3.bf16.msra.mxu0 %v595_v21  ;;  %v57_v47 = vsel %vm803_vm3, 0.0, %v507_v43  ;;  %v125_v48 = vld [vmem:[%s1015_s1 + $0xd0] sm:$0xff]  ;;  %v126_v49 = vld [vmem:[%s1015_s1 + $0xd8] sm:$0xff]  ;;  %v607_v50 = vpack.c.bf16 %v108_v46, %v107_v45  ;;  %v127_v54 = vld [vmem:[%s1015_s1 + $0xe0] sm:$0xff]  ;;  %213 = vst.msk [vmem:[#allocation2] sm:$0x1] %vm212_vm5, %v687_v17 }
   0xb   :  { %598 = vmatprep.subr.bf16.mxu0 %v597_v24  ;;  %v609_v51 = vpack.c.bf16 %v126_v49, %v125_v48  ;;  %v109_v52 = vld [vmem:[%s1015_s1 + $0x50] sm:$0xff]  ;;  %v110_v53 = vld [vmem:[%s1015_s1 + $0x58] sm:$0xff]  ;;  %v128_v55 = vld [vmem:[%s1015_s1 + $0xe8] sm:$0xff]  ;;  %vm501_vm0 = vcmask 517120  }
   0xc   :  { %v611_v56 = vpack.c.bf16 %v110_v53, %v109_v52  ;;  %v613_v57 = vpack.c.bf16 %v128_v55, %v127_v54  ;;  %v111_v58 = vld [vmem:[%s1015_s1 + $0x60] sm:$0xff]  ;;  %v112_v59 = vld [vmem:[%s1015_s1 + $0x68] sm:$0xff]  ;;  %v129_v60 = vld [vmem:[%s1015_s1 + $0xf0] sm:$0xff] }
   0xd   :  { %v130_v61 = vld [vmem:[%s1015_s1 + $0xf8] sm:$0xff]  ;;  %v615_v62 = vpack.c.bf16 %v112_v59, %v111_v58  ;;  %v113_v2 = vld [vmem:[%s1015_s1 + $0x70] sm:$0xff]  ;;  %v270_v18 = vld [vmem:[%s1016_s2 + $0x80] sm:$0xff] }
   0xe   :  { %670 = vrot.lane.b32.xlu0 %v669_v31, %s686_s29  ;;  %600 = vmatpush3.bf16.msra.mxu0 %v599_v32  ;;  %v617_v63 = vpack.c.bf16 %v130_v61, %v129_v60  ;;  %v114_v3 = vld [vmem:[%s1015_s1 + $0x78] sm:$0xff]  ;;  %v510_v6 = vld [vmem:[%s1014_s0 + $0x2] ss:$2 sm:$0xff] }
   0xf   :  { %602 = vmatprep.subr.bf16.mxu0 %v601_v33  ;;  %v619_v4 = vpack.c.bf16 %v114_v3, %v113_v2  ;;  %v511_v12 = vld [vmem:[%s1014_s0 + $0x12] ss:$2 sm:$0xff]  ;;  %v271_v19 = vld [vmem:[%s1016_s2 + $0x88] sm:$0xff] }
  0x10   :  { %v254_v20 = vld [vmem:[%s1016_s2] sm:$0xff]  ;;  %v621_v21 = vpack.c.bf16 %v271_v19, %v270_v18  ;;  %v255_v22 = vld [vmem:[%s1016_s2 + $0x8] sm:$0xff]  ;;  %v272_v23 = vld [vmem:[%s1016_s2 + $0x90] sm:$0xff] }
  0x11   :  { %v273_v24 = vld [vmem:[%s1016_s2 + $0x98] sm:$0xff]  ;;  %v623_v25 = vpack.c.bf16 %v255_v22, %v254_v20  ;;  %v256_v27 = vld [vmem:[%s1016_s2 + $0x10] sm:$0xff]  ;;  %v274_v29 = vld [vmem:[%s1016_s2 + $0xa0] sm:$0xff] }
  0x12   :  { %604 = vmatpush3.bf16.msra.mxu0 %v603_v41  ;;  %v625_v26 = vpack.c.bf16 %v273_v24, %v272_v23  ;;  %v257_v28 = vld [vmem:[%s1016_s2 + $0x18] sm:$0xff]  ;;  %622 = vmatprep.subr.bf16.mxu1 %v621_v21  ;;  %v275_v30 = vld [vmem:[%s1016_s2 + $0xa8] sm:$0xff]  ;;  %v258_v33 = vld [vmem:[%s1016_s2 + $0x20] sm:$0xff] }
  0x13   :  { %606 = vmatprep.subr.bf16.mxu0 %v605_v44  ;;  %624 = vmatpush3.bf16.msra.mxu1 %v623_v25  ;;  %v627_v31 = vpack.c.bf16 %v257_v28, %v256_v27  ;;  %v629_v32 = vpack.c.bf16 %v275_v30, %v274_v29  ;;  %v259_v34 = vld [vmem:[%s1016_s2 + $0x28] sm:$0xff]  ;;  %v276_v35 = vld [vmem:[%s1016_s2 + $0xb0] sm:$0xff]  ;;  %v277_v36 = vld [vmem:[%s1016_s2 + $0xb8] sm:$0xff] }
  0x14   :  { %626 = vmatprep.subr.bf16.mxu1 %v625_v26  ;;  %v631_v37 = vpack.c.bf16 %v259_v34, %v258_v33  ;;  %v633_v38 = vpack.c.bf16 %v277_v36, %v276_v35  ;;  %v260_v39 = vld [vmem:[%s1016_s2 + $0x30] sm:$0xff]  ;;  %v261_v40 = vld [vmem:[%s1016_s2 + $0x38] sm:$0xff]  ;;  %v278_v41 = vld [vmem:[%s1016_s2 + $0xc0] sm:$0xff] }
  0x15   :  { %v635_v43 = vpack.c.bf16 %v261_v40, %v260_v39  ;;  %v262_v45 = vld [vmem:[%s1016_s2 + $0x40] sm:$0xff]  ;;  %v263_v46 = vld [vmem:[%s1016_s2 + $0x48] sm:$0xff]  ;;  %v281_v48 = vld [vmem:[%s1016_s2 + $0xd8] sm:$0xff] }
  0x16   :  { %608 = vmatpush3.bf16.msra.mxu0 %v607_v50  ;;  %v639_v49 = vpack.c.bf16 %v263_v46, %v262_v45  ;;  %v265_v52 = vld [vmem:[%s1016_s2 + $0x58] sm:$0xff]  ;;  %v282_v53 = vld [vmem:[%s1016_s2 + $0xe0] sm:$0xff]  ;;  %v283_v54 = vld [vmem:[%s1016_s2 + $0xe8] sm:$0xff] }
  0x17   :  { %610 = vmatprep.subr.bf16.mxu0 %v609_v51  ;;  %628 = vmatpush3.bf16.msra.mxu1 %v627_v31  ;;  %v264_v51 = vld [vmem:[%s1016_s2 + $0x50] sm:$0xff]  ;;  %v267_v58 = vld [vmem:[%s1016_s2 + $0x68] sm:$0xff] }
  0x18   :  { %630 = vmatprep.subr.bf16.mxu1 %v629_v32  ;;  %v643_v55 = vpack.c.bf16 %v265_v52, %v264_v51 }
  0x1a   :  { %612 = vmatpush3.bf16.msra.mxu0 %v611_v56  ;;  %v645_v56 = vpack.c.bf16 %v283_v54, %v282_v53 }
  0x1b   :  { %614 = vmatprep.subr.bf16.mxu0 %v613_v57  ;;  %632 = vmatpush3.bf16.msra.mxu1 %v631_v37  ;;  %v266_v57 = vld [vmem:[%s1016_s2 + $0x60] sm:$0xff] }
  0x1c   :  { %634 = vmatprep.subr.bf16.mxu1 %v633_v38  ;;  %v647_v59 = vpack.c.bf16 %v267_v58, %v266_v57 }
  0x1e   :  { %616 = vmatpush3.bf16.msra.mxu0 %v615_v62 }
  0x1f   :  { %618 = vmatprep.subr.bf16.mxu0 %v617_v63  ;;  %636 = vmatpush3.bf16.msra.mxu1 %v635_v43 }
  0x22   :  { %620 = vmatpush3.bf16.msra.mxu0 %v619_v4 }
  0x7c   :  { %v666_v5 = vpop.permute.xlu0 %665 }
  0x7d   :  { %v668_v7 = vunpack.i.h.bf16 %v666_v5  ;;  %v667_v8 = vunpack.i.l.bf16 %v666_v5 }
  0x7f   :  { %v97_v9 = vsel %vm94_vm4, %v510_v6, %v667_v8  ;;  %v95_v10 = vsel %vm94_vm4, %v56_v42, %v668_v7  ;;  %v279_v42 = vld [vmem:[%s1016_s2 + $0xc8] sm:$0xff]  ;;  %v284_v6 = vld [vmem:[%s1016_s2 + $0xf0] sm:$0xff]  ;;  %v285_v7 = vld [vmem:[%s1016_s2 + $0xf8] sm:$0xff] }
  0x80   :  { %v671_v11 = vpop.permute.xlu0 %670  ;;  %195 = vmatprep.mubr.f32.mxu0 %v97_v9  ;;  %v637_v44 = vpack.c.bf16 %v279_v42, %v278_v41  ;;  %v649_v8 = vpack.c.bf16 %v285_v7, %v284_v6  ;;  %v268_v9 = vld [vmem:[%s1016_s2 + $0x70] sm:$0xff] }
  0x81   :  { %v673_v13 = vunpack.i.h.bf16 %v671_v11  ;;  %v672_v14 = vunpack.i.l.bf16 %v671_v11  ;;  %196 = vmatmul.mubr.f32.vlgmr.msra.gmra.mrb[0].mxu0 %v95_v10  ;;  %v269_v10 = vld [vmem:[%s1016_s2 + $0x78] sm:$0xff] }
  0x82   :  { %638 = vmatprep.subr.bf16.mxu1 %v637_v44 }
  0x83   :  { %v98_v15 = vsel %vm94_vm4, %v511_v12, %v672_v14  ;;  %v96_v16 = vsel %vm94_vm4, %v57_v47, %v673_v13  ;;  %v280_v47 = vld [vmem:[%s1016_s2 + $0xd0] sm:$0xff]  ;;  %640 = vmatpush3.bf16.msra.mxu1 %v639_v49  ;;  %v651_v12 = vpack.c.bf16 %v269_v10, %v268_v9  ;;  %v221_v14 = vand.u32 3, %v728_v1  ;;  %s688_s2 = smov 96  }
  0x84   :  { %200 = vmatprep.mubr.f32.mxu0 %v98_v15  ;;  %v641_v50 = vpack.c.bf16 %v281_v48, %v280_v47  ;;  %v395_v47 = vsub.s32 0, %v728_v1 }
  0x85   :  { %201 = vmatmul.mubr.f32.gmra.mrb[2].mxu0 %v96_v16  ;;  %vm240_vm8 = vcmp.eq.s32.totalorder %v221_v14, 3  ;;  %vm230_vm9 = vcmp.eq.s32.totalorder %v221_v14, 0 }
  0x86   :  { %642 = vmatprep.subr.bf16.mxu1 %v641_v50 }
  0x87   :  { %644 = vmatpush3.bf16.msra.mxu1 %v643_v55 }
  0x88   :  { %646 = vmatprep.subr.bf16.mxu1 %v645_v56 }
  0x8b   :  { %648 = vmatpush3.bf16.msra.mxu1 %v647_v59 }
  0x8c   :  { %650 = vmatprep.subr.bf16.mxu1 %v649_v8 }
  0x8f   :  { %652 = vmatpush3.bf16.msra.mxu1 %v651_v12 }
 0x154   :  { %v548_v60 = vpop.f32.mrb[0].mxu0 }
 0x155   :  { %v549_v61 = vpop.f32.mrb[1].mxu0 }
 0x156   :  { %v550_v62 = vadd.f32 %v549_v61, %v548_v60 }
 0x158   :  { %vm206_vm6 = vcmp.ge.f32.partialorder %v550_v62, 0.0  ;;  %v208_v63 = vmul.f32 0.2, %v550_v62  ;;  %v551_v2 = vpop.f32.mrb[2].mxu0 }
 0x159   :  { %v552_v3 = vpop.f32.mrb[3].mxu0 }
 0x15a   :  { %v210_v4 = vsel %vm206_vm6, %v550_v62, %v208_v63  ;;  %v553_v5 = vadd.f32 %v552_v3, %v551_v2 }
 0x15b   :  { %214 = vst.msk [vmem:[#allocation2 + $0x1] sm:$0xff] %vm94_vm4, %v210_v4 }
 0x15c   :  { %vm207_vm7 = vcmp.ge.f32.partialorder %v553_v5, 0.0  ;;  %v209_v11 = vmul.f32 0.2, %v553_v5 }
 0x15e   :  { %v211_v13 = vsel %vm207_vm7, %v553_v5, %v209_v11 }
 0x15f   :  { %215 = vst.msk [vmem:[#allocation2 + $0x9] sm:$0xff] %vm94_vm4, %v211_v13  ;;  %v433_v13 = vld [vmem:[%s1017_s4] sm:$0x1] }
 0x166   :  { %v235_v15 = vld [vmem:[#allocation2 + $0x1] ss:$2 sm:$0xff]  ;;  %v229_v19 = vld [vmem:[#allocation2] ss:$2 sm:$0xff] }
 0x167   :  { %v239_v16 = vld [vmem:[#allocation2 + $0x3] ss:$2 sm:$0xff]  ;;  %v237_v23 = vld [vmem:[#allocation2 + $0x2] ss:$2 sm:$0xff]  ;;  %v233_v24 = vsel %vm230_vm9, 0.0, %v229_v19 }
 0x168   :  { %v243_v17 = vsel %vm240_vm8, 0.0, %v239_v16 }
 0x169   :  { %v674_v18 = vpack.i.bf16 %v235_v15, %v243_v17  ;;  %v514_v17 = vld [vmem:[%s1017_s4 + $0x1] ss:$0 sm:$0xff] }
 0x16b   :  { %675 = vrot.lane.b32.xlu1 %v674_v18, %s686_s29  ;;  %s689_s29 = smov 112  }
 0x1dd   :  { %v676_v20 = vpop.permute.xlu1 %675 }
 0x1de   :  { %v678_v21 = vunpack.i.h.bf16 %v676_v20  ;;  %v677_v22 = vunpack.i.l.bf16 %v676_v20 }
 0x1e0   :  { %v253_v25 = vsel %vm94_vm4, %v237_v23, %v677_v22  ;;  %v252_v26 = vsel %vm94_vm4, %v233_v24, %v678_v21  ;;  %v451_v21 = vld [vmem:[%s1018_s3] sm:$0xff] }
 0x1e1   :  { %350 = vmatprep.mubr.f32.mxu1 %v253_v25  ;;  %v694_v25 = vmov 0  }
 0x1e2   :  { %351 = vmatmul.mubr.f32.vlgmr.msra.gmra.mrb[0].mxu1 %v252_v26  ;;  %679 = vset.pattern.permute.xlu0 %v694_v25  ;;  %v695_v26 = vmov 839922192  }
 0x2b5   :  { %v586_v27 = vpop.f32.mrb[0].mxu1 }
 0x2b6   :  { %v587_v28 = vpop.f32.mrb[1].mxu1 }
 0x2b7   :  { %v588_v29 = vadd.f32 %v587_v28, %v586_v27  ;;  %v458_v27 = vunpack.c.l.s4 %v695_v26 }
 0x2b9   :  { %v356_v30 = vsel %vm94_vm4, %v588_v29, 0.0  ;;  %v459_v28 = vunpack.c.0.s8 %v458_v27 }
 0x2ba   :  { %v357_v31 = vrot.slane %v356_v30, 4 }
 0x2bc   :  { %v358_v32 = vadd.f32 %v357_v31, %v356_v30  ;;  %v462_v31 = vsub.s32 %v459_v28, %v728_v1 }
 0x2be   :  { %v359_v33 = vrot.slane %v358_v32, 2 }
 0x2c0   :  { %v360_v34 = vadd.f32 %v359_v33, %v358_v32 }
 0x2c2   :  { %v361_v35 = vrot.slane %v360_v34, 1 }
 0x2c4   :  { %v362_v36 = vadd.f32 %v361_v35, %v360_v34 }
 0x2c6   :  { %368 = vrot.lane.b32.xlu0 %v362_v36, %s688_s2  ;;  %364 = vrot.lane.b32.xlu1 %v362_v36, %s689_s29 }
 0x2ca   :  { %372 = vrot.lane.b32.xlu1 %v362_v36, %s690_s11 }
 0x338   :  { %v365_v37 = vpop.permute.xlu1 %364  ;;  %v369_v39 = vpop.permute.xlu0 %368 }
 0x339   :  { %v367_v38 = vadd.f32 %v365_v37, %v362_v36  ;;  %v478_v37 = vand.u32 127, %v20_v0 }
 0x33b   :  { %v371_v40 = vadd.f32 %v369_v39, %v367_v38  ;;  %v481_v39 = vsub.s32 %v478_v37, %v728_v1 }
 0x33c   :  { %v373_v41 = vpop.permute.xlu1 %372 }
 0x33d   :  { %v375_v42 = vadd.f32 %v373_v41, %v371_v40 }
 0x33f   :  { %380 = vrot.lane.b32.xlu1 %v375_v42, %s691_s12  ;;  %377 = vrot.lane.b32.xlu0 %v375_v42, %s692_s13 }
 0x343   :  { %383 = vrot.lane.b32.xlu0 %v375_v42, %s693_s14 }
 0x3b1   :  { %v378_v43 = vpop.permute.xlu0 %377  ;;  %v381_v44 = vpop.permute.xlu1 %380 }
 0x3b2   :  { %v387_v45 = vsel %vm386_vm10, %v375_v42, %v378_v43 }
 0x3b3   :  { %v389_v46 = vsel %vm388_vm11, %v387_v45, %v381_v44 }
 0x3b5   :  { %v384_v48 = vpop.permute.xlu0 %383 }
 0x3b6   :  { %v391_v49 = vsel %vm390_vm12, %v389_v46, %v384_v48 }
 0x3b7   :  { %v392_v50 = vmul.f32 0.03125, %v391_v49 }
 0x3b9   :  { %v396_v51 = vrot.slane %v392_v50, %v395_v47 }
 0x3bb   :  { %v397_v52 = vsub.f32 %v588_v29, %v396_v51  ;;  %v696_v29 = vmov 1985246804  }
 0x3bc   :  { %v465_v30 = vunpack.c.l.s4 %v696_v29 }
 0x3bd   :  { %v398_v53 = vmul.f32 %v397_v52, %v397_v52 }
 0x3be   :  { %v466_v32 = vunpack.c.0.s8 %v465_v30 }
 0x3bf   :  { %v399_v54 = vsel %vm94_vm4, %v398_v53, 0.0 }
 0x3c0   :  { %v400_v55 = vrot.slane %v399_v54, 4  ;;  %v469_v34 = vsub.s32 %v466_v32, %v728_v1 }
 0x3c2   :  { %v401_v56 = vadd.f32 %v400_v55, %v399_v54 }
 0x3c4   :  { %v402_v57 = vrot.slane %v401_v56, 2 }
 0x3c6   :  { %v403_v58 = vadd.f32 %v402_v57, %v401_v56 }
 0x3c8   :  { %v404_v59 = vrot.slane %v403_v58, 1 }
 0x3ca   :  { %v405_v60 = vadd.f32 %v404_v59, %v403_v58 }
 0x3cc   :  { %411 = vrot.lane.b32.xlu0 %v405_v60, %s688_s2  ;;  %407 = vrot.lane.b32.xlu1 %v405_v60, %s689_s29 }
 0x3d0   :  { %415 = vrot.lane.b32.xlu1 %v405_v60, %s690_s11 }
 0x43e   :  { %v408_v61 = vpop.permute.xlu1 %407  ;;  %v412_v63 = vpop.permute.xlu0 %411 }
 0x43f   :  { %v410_v62 = vadd.f32 %v408_v61, %v405_v60 }
 0x441   :  { %v414_v2 = vadd.f32 %v412_v63, %v410_v62 }
 0x442   :  { %v416_v3 = vpop.permute.xlu1 %415 }
 0x443   :  { %v418_v4 = vadd.f32 %v416_v3, %v414_v2 }
 0x445   :  { %423 = vrot.lane.b32.xlu1 %v418_v4, %s691_s12  ;;  %420 = vrot.lane.b32.xlu0 %v418_v4, %s692_s13 }
 0x449   :  { %426 = vrot.lane.b32.xlu0 %v418_v4, %s693_s14 }
 0x4b7   :  { %v421_v5 = vpop.permute.xlu0 %420  ;;  %v424_v6 = vpop.permute.xlu1 %423 }
 0x4b8   :  { %v429_v7 = vsel %vm386_vm10, %v418_v4, %v421_v5 }
 0x4b9   :  { %v430_v8 = vsel %vm388_vm11, %v429_v7, %v424_v6 }
 0x4bb   :  { %v427_v9 = vpop.permute.xlu0 %426 }
 0x4bc   :  { %v431_v10 = vsel %vm390_vm12, %v430_v8, %v427_v9 }
 0x4bd   :  { %v432_v11 = vmul.f32 0.03125, %v431_v10 }
 0x4bf   :  { %v435_v12 = vadd.f32 1e-05, %v432_v11 }
 0x4c1   :  { %680 = vrsqrt.f32 %v435_v12 }
 0x4cb   :  { %v681_v14 = vpop.eup %680 }
 0x4cc   :  { %v437_v15 = vmul.f32 %v681_v14, %v433_v13 }
 0x4ce   :  { %v441_v16 = vrot.slane %v437_v15, %v395_v47 }
 0x4d0   :  { %v442_v18 = vmul.f32 %v441_v16, %v397_v52 }
 0x4d2   :  { %v447_v19 = vadd.f32 %v514_v17, %v442_v18 }
 0x4d4   :  { %vm448_vm13 = vcmp.ge.f32.partialorder %v447_v19, 0.0  ;;  %v449_v20 = vmul.f32 0.2, %v447_v19 }
 0x4d6   :  { %v450_v22 = vsel %vm448_vm13, %v447_v19, %v449_v20 }
 0x4d7   :  { %v452_v23 = vmul.f32 %v451_v21, %v450_v22  ;;  %500 = vst.msk [vmem:[%s1019_s5] sm:$0xff] %vm94_vm4, %v450_v22 }
 0x4d9   :  { %v453_v24 = vsel %vm94_vm4, %v452_v23, 0.0 }
 0x4da   :  { %454 = vadd.xlane.f32.xlu1 %v453_v24 }
 0x567   :  { %v455_v33 = vpop.xlane.xlu1 %454 }
 0x568   :  { %v463_v35 = vrot.slane %v455_v33, %v462_v31  ;;  %v470_v36 = vrot.slane %v455_v33, %v469_v34 }
 0x56a   :  { %472 = vperm.xlu0 %679, %v463_v35  }
 0x56e   :  { %475 = vperm.xlu0 %679, %v470_v36  }
 0x5e9   :  { %v473_v38 = vpop.permute.xlu0 %472 }
 0x5ea   :  { %v482_v41 = vrot.slane %v473_v38, %v481_v39 }
 0x5ed   :  { %v476_v40 = vpop.permute.xlu0 %475 }
 0x5ee   :  { %v486_v42 = vrot.slane %v476_v40, %v481_v39 }
 0x5f0   :  { %v488_v43 = vsel %vm487_vm14, %v486_v42, %v482_v41 }
 0x5f1   :  { %v491_v44 = vsel %vm490_vm15, %v488_v43, 0.0 }
 0x5f2   :  { %492 = vadd.xlane.f32.xlu0 %v491_v44 }
 0x67f   :  { %v493_v45 = vpop.xlane.xlu0 %492 }
 0x680   :  { %v515_v46 = vmul.f32 -1.442695, %v493_v45 }
 0x682   :  { %682 = vpow2.f32 %v515_v46 }
 0x68c   :  { %v683_v47 = vpop.eup %682 }
 0x68d   :  { %v497_v48 = vadd.f32 1.0, %v683_v47 }
 0x68f   :  { %684 = vrcp.f32 %v497_v48 }
 0x699   :  { %v685_v49 = vpop.eup %684 }
 0x69a   :  { %502 = vst.msk [vmem:[%s1019_s5 + $0x8] sm:$0x3] %vm501_vm0, %v685_v49 }

</bundles_post_ra>
